<compile_context>
chip_gen: v6e
topology: v6e:2x2x1
jax: 0.10.0
libtpu: 0.0.40
codegen_flags: <defaults>
</compile_context>

<pallas_src>
import functools

import jax
import jax.numpy as jnp
from jax.experimental import pallas as pl
from jax.experimental.pallas import tpu as pltpu


# -----------------------------------------------------------------------------
# Kernel
# -----------------------------------------------------------------------------
def _fused_mlp_kernel(num_layers, output_len, softmax_head, compute_dtype,
                      x_ref, is_battle_ref, w_ref, b_ref, out_ref):
    """One batch tile of: is_battle*battle_mlp(battle) + (1-is_battle)*game_mlp(game).

    x_ref         : (Btile, 2H)   compute_dtype  fused [game | battle | zero-pad]
    is_battle_ref : (Btile, 1)    f32            blend mask
    w_ref         : (L+1, 2H, 2H) compute_dtype  block-diagonal fused weights
    b_ref         : (L+1, 1, 2H)  f32            fused biases (f32 accumulation)
    out_ref       : (Btile, output_len) f32

    Layers 0..L-1: matmul -> +bias -> tanh.  Layer L: output head (no tanh).
    All matmuls hit the MXU with f32 accumulation; tanh/exp go to the EUP.
    """
    h = x_ref[...]
    for i in range(num_layers):                          # static unroll (L is tiny)
        acc = jnp.dot(h, w_ref[i], preferred_element_type=jnp.float32) + b_ref[i]
        h = jnp.tanh(acc).astype(compute_dtype)
    y = (jnp.dot(h, w_ref[num_layers], preferred_element_type=jnp.float32)
         + b_ref[num_layers])                            # (Btile, 2H) f32

    g_out = y[:, :output_len]                            # game head
    b_out = y[:, output_len:2 * output_len]              # battle head

    if softmax_head:
        if output_len == 1:
            # Softmax over a length-1 axis is identically 1.0 (module quirk);
            # skip the exp/reduce/recip chain entirely.
            g_out = jnp.ones_like(g_out)
            b_out = jnp.ones_like(b_out)
        else:
            def _softmax(z):
                z = z - jnp.max(z, axis=-1, keepdims=True)
                e = jnp.exp(z)
                return e * pl.reciprocal(jnp.sum(e, axis=-1, keepdims=True),
                                         approx=True)
            g_out = _softmax(g_out)
            b_out = _softmax(b_out)

    m = is_battle_ref[...]                               # (Btile, 1) -> broadcast
    # blend = (1-m)*g + m*b, written with one fewer multiply / broadcast.
    out_ref[...] = (g_out + m * (b_out - g_out)).astype(out_ref.dtype)


# -----------------------------------------------------------------------------
# Parameter init (nn.Linear-style) and fused packing
# -----------------------------------------------------------------------------
def _init_linear(key, fan_in, fan_out):
    kw, kb = jax.random.split(key)
    bound = 1.0 / jnp.sqrt(jnp.float32(fan_in))
    w = jax.random.uniform(kw, (fan_in, fan_out), jnp.float32, -bound, bound)
    b = jax.random.uniform(kb, (1, fan_out), jnp.float32, -bound, bound)
    return w, b


def init_mlp_params(key, emb_size, num_cells, num_layers, output_len):
    keys = jax.random.split(key, num_layers + 1)
    w0, b0 = _init_linear(keys[0], emb_size, num_cells)
    whs, bhs = [], []
    for i in range(num_layers - 1):
        w, b = _init_linear(keys[1 + i], num_cells, num_cells)
        whs.append(w)
        bhs.append(b)
    wo, bo = _init_linear(keys[num_layers], num_cells, output_len)
    if whs:
        wh = jnp.stack(whs, axis=0)                      # (num_layers-1, H, H)
        bh = jnp.stack(bhs, axis=0)                      # (num_layers-1, 1, H)
    else:
        wh = jnp.zeros((0, num_cells, num_cells), jnp.float32)
        bh = jnp.zeros((0, 1, num_cells), jnp.float32)
    return w0, b0, wh, bh, wo, bo


def pack_fused_params(game_params, battle_params, *, compute_dtype=jnp.bfloat16):
    """Pack both towers into one block-diagonal weight slab + one bias slab."""
    g_w0, g_b0, g_wh, g_bh, g_wo, g_bo = game_params
    b_w0, b_b0, b_wh, b_bh, b_wo, b_bo = battle_params
    ge, H = g_w0.shape
    be, Hb = b_w0.shape
    assert H == Hb, "both towers must share num_cells"
    num_hidden = g_wh.shape[0]
    out_len = g_wo.shape[1]
    H2 = 2 * H
    assert ge + be <= H2, "fused layout assumes game_emb + battle_emb <= 2*num_cells"
    assert 2 * out_len <= H2, "fused layout assumes output_len <= num_cells"

    ws, bs = [], []

    # Layer 0: input layout is [game (ge) | battle (be) | zero-pad to 2H].
    w0 = jnp.zeros((H2, H2), jnp.float32)
    w0 = w0.at[:ge, :H].set(g_w0)
    w0 = w0.at[ge:ge + be, H:].set(b_w0)
    ws.append(w0)
    bs.append(jnp.concatenate([g_b0.reshape(1, H), b_b0.reshape(1, H)], axis=-1))

    # Hidden layers: block-diagonal (game block | battle block).
    for i in range(num_hidden):
        wi = jnp.zeros((H2, H2), jnp.float32)
        wi = wi.at[:H, :H].set(g_wh[i])
        wi = wi.at[H:, H:].set(b_wh[i])
        ws.append(wi)
        bs.append(jnp.concatenate([g_bh[i].reshape(1, H), b_bh[i].reshape(1, H)],
                                  axis=-1))

    # Output head: game -> cols [0, out_len), battle -> cols [out_len, 2*out_len).
    wo = jnp.zeros((H2, H2), jnp.float32)
    wo = wo.at[:H, :out_len].set(g_wo)
    wo = wo.at[H:, out_len:2 * out_len].set(b_wo)
    bo = jnp.zeros((1, H2), jnp.float32)
    bo = bo.at[:, :out_len].set(g_bo.reshape(1, out_len))
    bo = bo.at[:, out_len:2 * out_len].set(b_bo.reshape(1, out_len))
    ws.append(wo)
    bs.append(bo)

    fused_w = jnp.stack(ws, axis=0).astype(compute_dtype)   # (L+1, 2H, 2H)
    fused_b = jnp.stack(bs, axis=0)                          # (L+1, 1, 2H) f32
    return fused_w, fused_b


# -----------------------------------------------------------------------------
# Wrapper
# -----------------------------------------------------------------------------
def _pick_batch_tile(batch, max_tile=128):
    """Largest divisor of `batch` that is a multiple of 8 and <= max_tile."""
    for t in range(min(batch, max_tile), 7, -1):
        if batch % t == 0 and t % 8 == 0:
            return t
    return batch


def simple_mlp_forward(game, battle, is_battle, fused_w, fused_b, *,
                       output_len=1, softmax_head=False, batch_tile=None):
    B = game.shape[0]
    L1, H2, _ = fused_w.shape
    num_layers = L1 - 1
    compute_dtype = fused_w.dtype

    # Layout plumbing (not compute hoisting): present one lane-contiguous
    # activation slab, already in the MXU compute dtype, so the kernel sees a
    # single fused input operand and the bf16 path halves input DMA bytes.
    x = jnp.concatenate([game, battle], axis=-1).astype(compute_dtype)
    pad = H2 - x.shape[1]
    if pad:
        x = jnp.pad(x, ((0, 0), (0, pad)))
    is_battle = is_battle.astype(jnp.float32)

    bt = batch_tile or _pick_batch_tile(B)
    assert B % bt == 0, "batch must be divisible by the batch tile"
    grid = (B // bt,)

    kernel = functools.partial(_fused_mlp_kernel, num_layers, output_len,
                               softmax_head, compute_dtype)

    return pl.pallas_call(
        kernel,
        out_shape=jax.ShapeDtypeStruct((B, output_len), jnp.float32),
        grid=grid,
        in_specs=[
            pl.BlockSpec((bt, H2), lambda i: (i, 0)),
            pl.BlockSpec((bt, 1), lambda i: (i, 0)),
            # Weight/bias slabs: identical block index every grid step, so they
            # are DMA'd once and stay resident in VMEM across all batch tiles.
            pl.BlockSpec((L1, H2, H2), lambda i: (0, 0, 0)),
            pl.BlockSpec((L1, 1, H2), lambda i: (0, 0, 0)),
        ],
        out_specs=pl.BlockSpec((bt, output_len), lambda i: (i, 0)),
        compiler_params=pltpu.CompilerParams(
            dimension_semantics=("parallel",)),   # v7x: split tiles across 2 TCs
    )(x, is_battle, fused_w, fused_b)


# -----------------------------------------------------------------------------
# Demo / correctness check
# -----------------------------------------------------------------------------
if __name__ == "__main__":
    # Batched call: at B=2 the kernel is pure launch overhead; B=256 with a
    # 128-row tile fills sublanes and gives a 2-tile parallel grid.
    B = 256
    GAME_EMB = 16      # GameEmbeddingModule.embedding_size (identity embedding)
    BATTLE_EMB = 24    # BattleEmbeddingModule.embedding_size (identity embedding)
    NUM_CELLS = 32
    NUM_LAYERS = 4

    root = jax.random.PRNGKey(0)
    k_game, k_battle, k_gp, k_bp, k_mask, k_gp2, k_bp2 = jax.random.split(root, 7)

    game = jax.random.normal(k_game, (B, GAME_EMB), jnp.float32)
    battle = jax.random.normal(k_battle, (B, BATTLE_EMB), jnp.float32)
    is_battle = jax.random.bernoulli(k_mask, 0.5, (B, 1)).astype(jnp.float32)

    # Pure-JAX reference on the ORIGINAL (unfused, per-layer) parameters.
    def ref_mlp(xx, params, softmax=False):
        w0, b0, wh, bh, wo, bo = params
        h = jnp.tanh(xx @ w0 + b0)
        for i in range(wh.shape[0]):
            h = jnp.tanh(h @ wh[i] + bh[i])
        out = h @ wo + bo
        return jax.nn.softmax(out, axis=-1) if softmax else out

    def ref_blend(gp, bp, softmax=False):
        return is_battle * ref_mlp(battle, bp, softmax) \
            + (1.0 - is_battle) * ref_mlp(game, gp, softmax)

    # ---- Case A: output_len=1, no softmax (the module defaults) -------------
    OUT1 = 1
    gp1 = init_mlp_params(k_gp, GAME_EMB, NUM_CELLS, NUM_LAYERS, OUT1)
    bp1 = init_mlp_params(k_bp, BATTLE_EMB, NUM_CELLS, NUM_LAYERS, OUT1)
    ref1 = ref_blend(gp1, bp1, softmax=False)

    # A1) Exact-weight (f32) path. Tolerance allows for MXU default-precision
    #     differences between the fused in-kernel dots and the XLA reference.
    w_f32, b_f32 = pack_fused_params(gp1, bp1, compute_dtype=jnp.float32)
    out_f32 = simple_mlp_forward(game, battle, is_battle, w_f32, b_f32,
                                 output_len=OUT1, softmax_head=False)
    jax.block_until_ready(out_f32)
    assert jnp.allclose(out_f32, ref1, atol=2e-2, rtol=2e-2), (out_f32[:4], ref1[:4])

    # A2) Fast path: bf16 weights/activations on the MXU, f32 accumulation.
    w_bf16, b_bf16 = pack_fused_params(gp1, bp1, compute_dtype=jnp.bfloat16)
    out_bf16 = simple_mlp_forward(game, battle, is_battle, w_bf16, b_bf16,
                                  output_len=OUT1, softmax_head=False)
    jax.block_until_ready(out_bf16)
    assert jnp.allclose(out_bf16, ref1, atol=1e-1, rtol=1e-1), (out_bf16[:4], ref1[:4])

    # ---- Case B: output_len=4, softmax head (exact f32 path) ----------------
    OUT4 = 4
    gp4 = init_mlp_params(k_gp2, GAME_EMB, NUM_CELLS, NUM_LAYERS, OUT4)
    bp4 = init_mlp_params(k_bp2, BATTLE_EMB, NUM_CELLS, NUM_LAYERS, OUT4)
    ref4 = ref_blend(gp4, bp4, softmax=True)

    w4_f32, b4_f32 = pack_fused_params(gp4, bp4, compute_dtype=jnp.float32)
    out4 = simple_mlp_forward(game, battle, is_battle, w4_f32, b4_f32,
                              output_len=OUT4, softmax_head=True)
    jax.block_until_ready(out4)
    assert jnp.allclose(out4, ref4, atol=2e-2, rtol=2e-2), (out4[:2], ref4[:2])

    print("KERNEL_OK")
</pallas_src>

<mosaic_0001>
module attributes {stable_mosaic.version = 11 : i64} {
  func.func @_fused_mlp_kernel(%arg0: i32, %arg1: memref<128x64xf32, #tpu.memory_space<vmem>>, %arg2: memref<128x1xf32, #tpu.memory_space<vmem>>, %arg3: memref<5x64x64xf32, #tpu.memory_space<vmem>>, %arg4: memref<5x1x64xf32, #tpu.memory_space<vmem>>, %arg5: memref<128x1xf32, #tpu.memory_space<vmem>>) attributes {dimension_semantics = [#tpu.dimension_semantics<parallel>], iteration_bounds = array<i64: 2>, scalar_prefetch = 0 : i64, scratch_operands = 0 : i64, tpu.core_type = #tpu.core_type<tc>, window_params = [{transform_indices = @transform_0, window_bounds = array<i64: 128, 64>}, {transform_indices = @transform_1, window_bounds = array<i64: 128, 1>}, {pipeline_mode = #tpu.pipeline_mode<synchronous>, transform_indices = @transform_2, window_bounds = array<i64: 5, 64, 64>}, {pipeline_mode = #tpu.pipeline_mode<synchronous>, transform_indices = @transform_3, window_bounds = array<i64: 5, 1, 64>}, {transform_indices = @transform_4, window_bounds = array<i64: 128, 1>}]} {
    %c0 = arith.constant 0 : index
    %c0_0 = arith.constant 0 : index
    %0 = vector.load %arg1[%c0, %c0_0] : memref<128x64xf32, #tpu.memory_space<vmem>>, vector<128x64xf32>
    %c0_1 = arith.constant 0 : index
    %c0_2 = arith.constant 0 : index
    %c0_3 = arith.constant 0 : index
    %1 = vector.load %arg3[%c0_1, %c0_2, %c0_3] : memref<5x64x64xf32, #tpu.memory_space<vmem>>, vector<1x64x64xf32>
    %2 = vector.shape_cast %1 : vector<1x64x64xf32> to vector<64x64xf32>
    %cst = arith.constant dense<0.000000e+00> : vector<128x64xf32>
    %3 = tpu.matmul %0, %2, %cst {dimension_numbers = #tpu.dot_dimension_numbers<[1], [0], [0], [1], [0, 0, 1, 1], [], []>} : vector<128x64xf32>, vector<64x64xf32>, vector<128x64xf32> -> vector<128x64xf32>
    %c0_4 = arith.constant 0 : index
    %c0_5 = arith.constant 0 : index
    %c0_6 = arith.constant 0 : index
    %4 = vector.load %arg4[%c0_4, %c0_5, %c0_6] : memref<5x1x64xf32, #tpu.memory_space<vmem>>, vector<1x1x64xf32>
    %5 = vector.shape_cast %4 : vector<1x1x64xf32> to vector<1x64xf32>
    %6 = vector.broadcast %5 : vector<1x64xf32> to vector<128x64xf32>
    %7 = arith.addf %3, %6 : vector<128x64xf32>
    %8 = math.tanh %7 : vector<128x64xf32>
    %c1 = arith.constant 1 : index
    %c0_7 = arith.constant 0 : index
    %c0_8 = arith.constant 0 : index
    %9 = vector.load %arg3[%c1, %c0_7, %c0_8] : memref<5x64x64xf32, #tpu.memory_space<vmem>>, vector<1x64x64xf32>
    %10 = vector.shape_cast %9 : vector<1x64x64xf32> to vector<64x64xf32>
    %cst_9 = arith.constant dense<0.000000e+00> : vector<128x64xf32>
    %11 = tpu.matmul %8, %10, %cst_9 {dimension_numbers = #tpu.dot_dimension_numbers<[1], [0], [0], [1], [0, 0, 1, 1], [], []>} : vector<128x64xf32>, vector<64x64xf32>, vector<128x64xf32> -> vector<128x64xf32>
    %c1_10 = arith.constant 1 : index
    %c0_11 = arith.constant 0 : index
    %c0_12 = arith.constant 0 : index
    %12 = vector.load %arg4[%c1_10, %c0_11, %c0_12] : memref<5x1x64xf32, #tpu.memory_space<vmem>>, vector<1x1x64xf32>
    %13 = vector.shape_cast %12 : vector<1x1x64xf32> to vector<1x64xf32>
    %14 = vector.broadcast %13 : vector<1x64xf32> to vector<128x64xf32>
    %15 = arith.addf %11, %14 : vector<128x64xf32>
    %16 = math.tanh %15 : vector<128x64xf32>
    %c2 = arith.constant 2 : index
    %c0_13 = arith.constant 0 : index
    %c0_14 = arith.constant 0 : index
    %17 = vector.load %arg3[%c2, %c0_13, %c0_14] : memref<5x64x64xf32, #tpu.memory_space<vmem>>, vector<1x64x64xf32>
    %18 = vector.shape_cast %17 : vector<1x64x64xf32> to vector<64x64xf32>
    %cst_15 = arith.constant dense<0.000000e+00> : vector<128x64xf32>
    %19 = tpu.matmul %16, %18, %cst_15 {dimension_numbers = #tpu.dot_dimension_numbers<[1], [0], [0], [1], [0, 0, 1, 1], [], []>} : vector<128x64xf32>, vector<64x64xf32>, vector<128x64xf32> -> vector<128x64xf32>
    %c2_16 = arith.constant 2 : index
    %c0_17 = arith.constant 0 : index
    %c0_18 = arith.constant 0 : index
    %20 = vector.load %arg4[%c2_16, %c0_17, %c0_18] : memref<5x1x64xf32, #tpu.memory_space<vmem>>, vector<1x1x64xf32>
    %21 = vector.shape_cast %20 : vector<1x1x64xf32> to vector<1x64xf32>
    %22 = vector.broadcast %21 : vector<1x64xf32> to vector<128x64xf32>
    %23 = arith.addf %19, %22 : vector<128x64xf32>
    %24 = math.tanh %23 : vector<128x64xf32>
    %c3 = arith.constant 3 : index
    %c0_19 = arith.constant 0 : index
    %c0_20 = arith.constant 0 : index
    %25 = vector.load %arg3[%c3, %c0_19, %c0_20] : memref<5x64x64xf32, #tpu.memory_space<vmem>>, vector<1x64x64xf32>
    %26 = vector.shape_cast %25 : vector<1x64x64xf32> to vector<64x64xf32>
    %cst_21 = arith.constant dense<0.000000e+00> : vector<128x64xf32>
    %27 = tpu.matmul %24, %26, %cst_21 {dimension_numbers = #tpu.dot_dimension_numbers<[1], [0], [0], [1], [0, 0, 1, 1], [], []>} : vector<128x64xf32>, vector<64x64xf32>, vector<128x64xf32> -> vector<128x64xf32>
    %c3_22 = arith.constant 3 : index
    %c0_23 = arith.constant 0 : index
    %c0_24 = arith.constant 0 : index
    %28 = vector.load %arg4[%c3_22, %c0_23, %c0_24] : memref<5x1x64xf32, #tpu.memory_space<vmem>>, vector<1x1x64xf32>
    %29 = vector.shape_cast %28 : vector<1x1x64xf32> to vector<1x64xf32>
    %30 = vector.broadcast %29 : vector<1x64xf32> to vector<128x64xf32>
    %31 = arith.addf %27, %30 : vector<128x64xf32>
    %32 = math.tanh %31 : vector<128x64xf32>
    %c4 = arith.constant 4 : index
    %c0_25 = arith.constant 0 : index
    %c0_26 = arith.constant 0 : index
    %33 = vector.load %arg3[%c4, %c0_25, %c0_26] : memref<5x64x64xf32, #tpu.memory_space<vmem>>, vector<1x64x64xf32>
    %34 = vector.shape_cast %33 : vector<1x64x64xf32> to vector<64x64xf32>
    %cst_27 = arith.constant dense<0.000000e+00> : vector<128x64xf32>
    %35 = tpu.matmul %32, %34, %cst_27 {dimension_numbers = #tpu.dot_dimension_numbers<[1], [0], [0], [1], [0, 0, 1, 1], [], []>} : vector<128x64xf32>, vector<64x64xf32>, vector<128x64xf32> -> vector<128x64xf32>
    %c4_28 = arith.constant 4 : index
    %c0_29 = arith.constant 0 : index
    %c0_30 = arith.constant 0 : index
    %36 = vector.load %arg4[%c4_28, %c0_29, %c0_30] : memref<5x1x64xf32, #tpu.memory_space<vmem>>, vector<1x1x64xf32>
    %37 = vector.shape_cast %36 : vector<1x1x64xf32> to vector<1x64xf32>
    %38 = vector.broadcast %37 : vector<1x64xf32> to vector<128x64xf32>
    %39 = arith.addf %35, %38 : vector<128x64xf32>
    %40 = vector.extract_strided_slice %39 {offsets = [0, 0], sizes = [128, 1], strides = [1, 1]} : vector<128x64xf32> to vector<128x1xf32>
    %41 = vector.extract_strided_slice %39 {offsets = [0, 1], sizes = [128, 1], strides = [1, 1]} : vector<128x64xf32> to vector<128x1xf32>
    %c0_31 = arith.constant 0 : index
    %c0_32 = arith.constant 0 : index
    %42 = vector.load %arg2[%c0_31, %c0_32] : memref<128x1xf32, #tpu.memory_space<vmem>>, vector<128x1xf32>
    %43 = arith.subf %41, %40 : vector<128x1xf32>
    %44 = arith.mulf %42, %43 : vector<128x1xf32>
    %45 = arith.addf %40, %44 : vector<128x1xf32>
    %c0_33 = arith.constant 0 : index
    %c0_34 = arith.constant 0 : index
    %46 = vector.load %arg5[%c0_33, %c0_34] : memref<128x1xf32, #tpu.memory_space<vmem>>, vector<128x1xf32>
    tpu.vector_store %arg5[%c0_33, %c0_34], %45 {strides = array<i32>} : memref<128x1xf32, #tpu.memory_space<vmem>>, vector<128x1xf32>,
    return
  }
  func.func @transform_0(%arg0: i32) -> (i32, i32) {
    %c0_i32 = arith.constant 0 : i32
    %c0_i32_0 = arith.constant 0 : i32
    return %arg0, %c0_i32 : i32, i32
  }
  func.func @transform_1(%arg0: i32) -> (i32, i32) {
    %c0_i32 = arith.constant 0 : i32
    %c0_i32_0 = arith.constant 0 : i32
    return %arg0, %c0_i32 : i32, i32
  }
  func.func @transform_2(%arg0: i32) -> (i32, i32, i32) {
    %c0_i32 = arith.constant 0 : i32
    %c0_i32_0 = arith.constant 0 : i32
    %c0_i32_1 = arith.constant 0 : i32
    %c0_i32_2 = arith.constant 0 : i32
    return %c0_i32, %c0_i32_0, %c0_i32_1 : i32, i32, i32
  }
  func.func @transform_3(%arg0: i32) -> (i32, i32, i32) {
    %c0_i32 = arith.constant 0 : i32
    %c0_i32_0 = arith.constant 0 : i32
    %c0_i32_1 = arith.constant 0 : i32
    %c0_i32_2 = arith.constant 0 : i32
    return %c0_i32, %c0_i32_0, %c0_i32_1 : i32, i32, i32
  }
  func.func @transform_4(%arg0: i32) -> (i32, i32) {
    %c0_i32 = arith.constant 0 : i32
    %c0_i32_0 = arith.constant 0 : i32
    return %arg0, %c0_i32 : i32, i32
  }
}

</mosaic_0001>

<bundles_post_ra>
// kernel: tpu_custom_call.1
= control target key start
LH: loop header
LB: loop body
LE: loop exit
PB: predicated region body
PF: predicated region fallthrough
CT: control target
= control target key end

     0   :  { %s2272_s15 = smov 0   ;;  %s2694_s0 = inlined_call_operand.vmem [shape: f32[256,64], index: 0, kind: input, shape index: {}]   ;;  %s2695_s1 = inlined_call_operand.vmem [shape: f32[256,1], index: 1, kind: input, shape index: {}]   ;;  %s2696_s2 = inlined_call_operand.vmem [shape: f32[5,64,64], index: 2, kind: input, shape index: {}]   ;;  %s2697_s3 = inlined_call_operand.vmem [shape: f32[5,1,64], index: 3, kind: input, shape index: {}]   ;;  %s2698_s4 = inlined_call_operand.vmem [shape: f32[256,1], index: 4, kind: output, shape index: {}]  }
   0x1 LB: > { %s1629_s16 = sadd.s32 4294967295, %s2243_s15   ;;  %p1633_p0 = scmp.ge.s32.totalorder %s2243_s15, 1  ;;  %s2243_s15 = sphi %s2272_s15, %s14_s15  }
   0x2   : > { %p174_p1 = scmp.lt.s32.totalorder %s2243_s15, 3 }
   0x4   : > { %p175_p2 = pnand %p1633_p0, %p174_p1 }
   0x5   : > { %s1634_s21 = sshll.u32 (!%p175_p2), %s1629_s16, 4  ;;  %s2245_s14 = smov (!%p175_p2), 1  }
   0x6   : > { %178 = sbr.rel (%p175_p2) target bundleno = 1340 (0x53c), region = 36  ;;  %p206_p3 = scmp.lt.s32.totalorder (!%p175_p2), %s1634_s21, 31 }
   0x7   : > { %s2246_s16 = smov (!%p175_p2), 127  }
   0xb   : > { %v246_v0 = vld [vmem:[%s2696_s2 + $0x38] sm:$0xff]  ;;  %v245_v1 = vld [vmem:[%s2696_s2 + $0x30] sm:$0xff]  ;;  %v244_v2 = vld [vmem:[%s2696_s2 + $0x28] sm:$0xff]  ;;  %s2700_s21 = smov (!%p206_p3, %s1634_s21), 31  ;;  %vm254_vm0 = vcmask 523264   ;;  %vm1544_vm1 = vcmask 7168  }
   0xc   : > { %1883 = vmatprep.subr.mxu0 %v246_v0  ;;  %2083 = vmatprep.subr.mxu1 %v246_v0  ;;  %v243_v3 = vld [vmem:[%s2696_s2 + $0x20] sm:$0xff]  ;;  %s2292_s26 = sshll.u32 %s2700_s21, 3  ;;  %v242_v4 = vld [vmem:[%s2696_s2 + $0x18] sm:$0xff]  ;;  %v241_v6 = vld [vmem:[%s2696_s2 + $0x10] sm:$0xff] }
   0xd   : > { %1884 = vmatpush3.msra.mxu0 %v246_v0  ;;  %2091 = vmatpush3.msra.mxu1 %v246_v0  ;;  %s2301_s5 = scalar_lea.vmem %s2694_s0, %s2292_s26  ;;  %v240_v7 = vld [vmem:[%s2696_s2 + $0x8] sm:$0xff]  ;;  %v239_v8 = vld [vmem:[%s2696_s2] sm:$0xff]  ;;  %v1664_v24 = vld [vmem:[%s2696_s2 + $0x78] sm:$0xff]  ;;  %s2619_s19 = scalar_lea.vmem %s2695_s1, %s2292_s26 }
   0xe   : > { %1885 = vmatprep.subr.mxu0 %v245_v1  ;;  %2084 = vmatprep.subr.mxu1 %v245_v1  ;;  %v223_v5 = vld [vmem:[%s2301_s5] sm:$0xff]  ;;  %v224_v9 = vld [vmem:[%s2301_s5 + $0x8] sm:$0xff]  ;;  %v225_v10 = vld [vmem:[%s2301_s5 + $0x10] sm:$0xff]  ;;  %s2626_s22 = scalar_lea.vmem %s2698_s4, %s2292_s26 }
   0xf   : > { %1886 = vmatpush3.msra.mxu0 %v245_v1  ;;  %2092 = vmatpush3.msra.mxu1 %v245_v1  ;;  %v231_v11 = vld [vmem:[%s2301_s5 + $0x40] sm:$0xff]  ;;  %v232_v12 = vld [vmem:[%s2301_s5 + $0x48] sm:$0xff]  ;;  %v233_v13 = vld [vmem:[%s2301_s5 + $0x50] sm:$0xff] }
  0x10   : > { %1887 = vmatprep.subr.mxu0 %v244_v2  ;;  %2085 = vmatprep.subr.mxu1 %v244_v2  ;;  %v226_v14 = vld [vmem:[%s2301_s5 + $0x18] sm:$0xff]  ;;  %v227_v15 = vld [vmem:[%s2301_s5 + $0x20] sm:$0xff]  ;;  %v228_v18 = vld [vmem:[%s2301_s5 + $0x28] sm:$0xff] }
  0x11   : > { %1888 = vmatpush3.msra.mxu0 %v244_v2  ;;  %2093 = vmatpush3.msra.mxu1 %v244_v2  ;;  %v234_v16 = vld [vmem:[%s2301_s5 + $0x58] sm:$0xff]  ;;  %v235_v17 = vld [vmem:[%s2301_s5 + $0x60] sm:$0xff]  ;;  %v229_v19 = vld [vmem:[%s2301_s5 + $0x30] sm:$0xff] }
  0x12   : > { %1889 = vmatprep.subr.mxu0 %v243_v3  ;;  %2086 = vmatprep.subr.mxu1 %v243_v3  ;;  %v236_v20 = vld [vmem:[%s2301_s5 + $0x68] sm:$0xff]  ;;  %v237_v21 = vld [vmem:[%s2301_s5 + $0x70] sm:$0xff]  ;;  %v230_v22 = vld [vmem:[%s2301_s5 + $0x38] sm:$0xff] }
  0x13   : > { %1890 = vmatpush3.msra.mxu0 %v243_v3  ;;  %1899 = vmatprep.mubr.msk.f32.mxu0 %vm254_vm0, %v223_v5  ;;  %v238_v23 = vld [vmem:[%s2301_s5 + $0x78] sm:$0xff]  ;;  %v1663_v25 = vld [vmem:[%s2696_s2 + $0x70] sm:$0xff]  ;;  %v1662_v26 = vld [vmem:[%s2696_s2 + $0x68] sm:$0xff] }
  0x14   : > { %1891 = vmatprep.subr.mxu0 %v242_v4  ;;  %2094 = vmatpush3.msra.mxu1 %v243_v3  ;;  %v1661_v27 = vld [vmem:[%s2696_s2 + $0x60] sm:$0xff]  ;;  %v1660_v28 = vld [vmem:[%s2696_s2 + $0x58] sm:$0xff]  ;;  %v1659_v29 = vld [vmem:[%s2696_s2 + $0x50] sm:$0xff] }
  0x15   : > { %1892 = vmatpush3.msra.mxu0 %v242_v4  ;;  %2087 = vmatprep.subr.mxu1 %v242_v4  ;;  %v1658_v30 = vld [vmem:[%s2696_s2 + $0x48] sm:$0xff]  ;;  %v1657_v31 = vld [vmem:[%s2696_s2 + $0x40] sm:$0xff] }
  0x16   : > { %1893 = vmatprep.subr.mxu0 %v241_v6  ;;  %2095 = vmatpush3.msra.mxu1 %v242_v4  ;;  %v1640_v32 = vld [vmem:[%s2697_s3] ss:$0 sm:$0xff] }
  0x17   : > { %1894 = vmatpush3.msra.mxu0 %v241_v6  ;;  %2088 = vmatprep.subr.mxu1 %v241_v6 }
  0x18   : > { %1895 = vmatprep.subr.mxu0 %v240_v7  ;;  %2096 = vmatpush3.msra.mxu1 %v241_v6 }
  0x19   : > { %1896 = vmatpush3.msra.mxu0 %v240_v7  ;;  %2089 = vmatprep.subr.mxu1 %v240_v7 }
  0x1a   : > { %1897 = vmatprep.subr.mxu0 %v239_v8  ;;  %2097 = vmatpush3.msra.mxu1 %v240_v7 }
  0x1b   : > { %1898 = vmatpush3.msra.mxu0 %v239_v8  ;;  %2090 = vmatprep.subr.mxu1 %v239_v8 }
  0x1c   : > { %1900 = vmatmul.mubr.msk.f32.vlgmr.msra.gmra.mxu0 %vm254_vm0, %v224_v9  ;;  %2098 = vmatpush3.msra.mxu1 %v239_v8 }
  0x1d   : > { %1902 = vmatprep.mubr.msk.f32.mxu0 %vm254_vm0, %v225_v10  ;;  %1911 = vmatprep.mubr.msk.f32.mxu1 %vm254_vm0, %v231_v11 }
  0x1e   : > { %1912 = vmatmul.mubr.msk.f32.vlgmr.msra.gmra.mxu1 %vm254_vm0, %v232_v12  ;;  %1923 = vmatprep.subr.mxu1 %v1664_v24 }
  0x1f   : > { %1914 = vmatprep.mubr.msk.f32.mxu1 %vm254_vm0, %v233_v13  ;;  %1924 = vmatpush3.msra.mxu1 %v1664_v24  ;;  %v1683_v24 = vld [vmem:[%s2696_s2 + $0x80] sm:$0xff] }
  0x20   : > { %1903 = vmatmul.mubr.msk.f32.gmra.mxu0 %vm254_vm0, %v226_v14  ;;  %1925 = vmatprep.subr.mxu1 %v1663_v25 }
  0x21   : > { %1905 = vmatprep.mubr.msk.f32.mxu0 %vm254_vm0, %v227_v15  ;;  %1926 = vmatpush3.msra.mxu1 %v1663_v25  ;;  %v1716_v25 = vld [vmem:[%s2696_s2 + $0xf8] sm:$0xff] }
  0x22   : > { %1915 = vmatmul.mubr.msk.f32.gmra.mxu1 %vm254_vm0, %v234_v16  ;;  %1927 = vmatprep.subr.mxu1 %v1662_v26 }
  0x23   : > { %1917 = vmatprep.mubr.msk.f32.mxu1 %vm254_vm0, %v235_v17  ;;  %1928 = vmatpush3.msra.mxu1 %v1662_v26  ;;  %v1690_v17 = vld [vmem:[%s2696_s2 + $0xb8] sm:$0xff]  ;;  %v1715_v26 = vld [vmem:[%s2696_s2 + $0xf0] sm:$0xff] }
  0x24   : > { %1906 = vmatmul.mubr.msk.f32.gmra.mxu0 %vm254_vm0, %v228_v18  ;;  %1929 = vmatprep.subr.mxu1 %v1661_v27  ;;  %v1689_v18 = vld [vmem:[%s2696_s2 + $0xb0] sm:$0xff] }
  0x25   : > { %1908 = vmatprep.mubr.msk.f32.mxu0 %vm254_vm0, %v229_v19  ;;  %1930 = vmatpush3.msra.mxu1 %v1661_v27  ;;  %v1688_v19 = vld [vmem:[%s2696_s2 + $0xa8] sm:$0xff] }
  0x26   : > { %1918 = vmatmul.mubr.msk.f32.gmra.mxu1 %vm254_vm0, %v236_v20  ;;  %1931 = vmatprep.subr.mxu1 %v1660_v28  ;;  %v1687_v20 = vld [vmem:[%s2696_s2 + $0xa0] sm:$0xff]  ;;  %v1714_v27 = vld [vmem:[%s2696_s2 + $0xe8] sm:$0xff] }
  0x27   : > { %1920 = vmatprep.mubr.msk.f32.mxu1 %vm254_vm0, %v237_v21  ;;  %1932 = vmatpush3.msra.mxu1 %v1660_v28  ;;  %v1686_v21 = vld [vmem:[%s2696_s2 + $0x98] sm:$0xff]  ;;  %v1713_v28 = vld [vmem:[%s2696_s2 + $0xe0] sm:$0xff] }
  0x28   : > { %1909 = vmatmul.mubr.msk.f32.gmra.mxu0 %vm254_vm0, %v230_v22  ;;  %1933 = vmatprep.subr.mxu1 %v1659_v29  ;;  %v1685_v22 = vld [vmem:[%s2696_s2 + $0x90] sm:$0xff] }
  0x29   : > { %1934 = vmatpush3.msra.mxu1 %v1659_v29  ;;  %1963 = vmatprep.subr.mxu0 %v1690_v17  ;;  %v1666_v29 = vld [vmem:[%s2697_s3 + $0x1] ss:$0 sm:$0xff] }
  0x2a   : > { %1921 = vmatmul.mubr.msk.f32.gmra.mxu1 %vm254_vm0, %v238_v23  ;;  %1935 = vmatprep.subr.mxu1 %v1658_v30  ;;  %v1684_v23 = vld [vmem:[%s2696_s2 + $0x88] sm:$0xff] }
  0x2b   : > { %1936 = vmatpush3.msra.mxu1 %v1658_v30  ;;  %1964 = vmatpush3.msra.mxu0 %v1690_v17  ;;  %v1709_v17 = vld [vmem:[%s2696_s2 + $0xc0] sm:$0xff] }
  0x2c   : > { %1937 = vmatprep.subr.mxu1 %v1657_v31  ;;  %1965 = vmatprep.subr.mxu0 %v1689_v18 }
  0x2d   : > { %1938 = vmatpush3.msra.mxu1 %v1657_v31  ;;  %1966 = vmatpush3.msra.mxu0 %v1689_v18  ;;  %v1742_v18 = vld [vmem:[%s2696_s2 + $0x138] sm:$0xff] }
  0x2e   : > { %1967 = vmatprep.subr.mxu0 %v1688_v19  ;;  %2003 = vmatprep.subr.mxu1 %v1716_v25 }
  0x2f   : > { %1968 = vmatpush3.msra.mxu0 %v1688_v19  ;;  %v1741_v19 = vld [vmem:[%s2696_s2 + $0x130] sm:$0xff] }
  0x30   : > { %1969 = vmatprep.subr.mxu0 %v1687_v20 }
  0x31   : > { %1970 = vmatpush3.msra.mxu0 %v1687_v20  ;;  %v1740_v20 = vld [vmem:[%s2696_s2 + $0x128] sm:$0xff] }
  0x32   : > { %1971 = vmatprep.subr.mxu0 %v1686_v21 }
  0x33   : > { %1972 = vmatpush3.msra.mxu0 %v1686_v21  ;;  %v1739_v21 = vld [vmem:[%s2696_s2 + $0x120] sm:$0xff] }
  0x34   : > { %1973 = vmatprep.subr.mxu0 %v1685_v22 }
  0x35   : > { %1974 = vmatpush3.msra.mxu0 %v1685_v22  ;;  %v1692_v22 = vld [vmem:[%s2697_s3 + $0x2] ss:$0 sm:$0xff] }
  0x36   : > { %1975 = vmatprep.subr.mxu0 %v1684_v23 }
  0x37   : > { %1976 = vmatpush3.msra.mxu0 %v1684_v23 }
  0x38   : > { %1977 = vmatprep.subr.mxu0 %v1683_v24 }
  0x39   : > { %1978 = vmatpush3.msra.mxu0 %v1683_v24 }
  0x3a   : > { %2043 = vmatprep.subr.mxu0 %v1742_v18 }
  0xdc   : > { %v1901_v33 = vpop.f32.mrf.mxu0 }
  0xdd   : > { %v375_v34 = vadd.f32 %v1901_v33, %v1640_v32 }
  0xde   : > { %v369_v35 = vpop.f32.mrf.mxu0  ;;  %v1913_v36 = vpop.f32.mrf.mxu1 }
  0xdf   : > { %v370_v37 = vadd.f32 %v1640_v32, %v369_v35  ;;  %v415_v56 = vadd.f32 %v1913_v36, %v1640_v32 }
  0xe0   : > { %v1904_v38 = vpop.f32.mrf.mxu0  ;;  %v409_v39 = vpop.f32.mrf.mxu1 }
  0xe1   : > { %2109 = vtanh.f32 %v370_v37  ;;  %v385_v40 = vadd.f32 %v1904_v38, %v1640_v32  ;;  %v410_v50 = vadd.f32 %v1640_v32, %v409_v39 }
  0xe2   : > { %2111 = vtanh.f32 %v375_v34  ;;  %v379_v41 = vpop.f32.mrf.mxu0  ;;  %v1916_v42 = vpop.f32.mrf.mxu1 }
  0xe3   : > { %v380_v43 = vadd.f32 %v1640_v32, %v379_v41  ;;  %v425_v61 = vadd.f32 %v1916_v42, %v1640_v32 }
  0xe4   : > { %v1907_v44 = vpop.f32.mrf.mxu0  ;;  %v419_v45 = vpop.f32.mrf.mxu1 }
  0xe5   : > { %2113 = vtanh.f32 %v380_v43  ;;  %v395_v46 = vadd.f32 %v1907_v44, %v1640_v32  ;;  %v420_v57 = vadd.f32 %v1640_v32, %v419_v45 }
  0xe6   : > { %2115 = vtanh.f32 %v385_v40  ;;  %v389_v47 = vpop.f32.mrf.mxu0  ;;  %v1919_v48 = vpop.f32.mrf.mxu1 }
  0xe7   : > { %v390_v49 = vadd.f32 %v1640_v32, %v389_v47  ;;  %2117 = vtanh.f32 %v395_v46  ;;  %v435_v2 = vadd.f32 %v1919_v48, %v1640_v32 }
  0xe8   : > { %v1910_v51 = vpop.f32.mrf.mxu0  ;;  %v429_v54 = vpop.f32.mrf.mxu1 }
  0xe9   : > { %2119 = vtanh.f32 %v390_v49  ;;  %v405_v52 = vadd.f32 %v1910_v51, %v1640_v32  ;;  %v430_v62 = vadd.f32 %v1640_v32, %v429_v54 }
  0xea   : > { %v399_v53 = vpop.f32.mrf.mxu0  ;;  %2121 = vtanh.f32 %v410_v50  ;;  %v1922_v59 = vpop.f32.mrf.mxu1 }
  0xeb   : > { %v400_v55 = vadd.f32 %v1640_v32, %v399_v53  ;;  %2123 = vtanh.f32 %v405_v52  ;;  %v445_v7 = vadd.f32 %v1922_v59, %v1640_v32 }
  0xec   : > { %v439_v0 = vpop.f32.mrf.mxu1 }
  0xed   : > { %2125 = vtanh.f32 %v400_v55  ;;  %v440_v4 = vadd.f32 %v1640_v32, %v439_v0 }
  0xee   : > { %v2110_v58 = vpop.eup %2109  ;;  %2127 = vtanh.f32 %v415_v56 }
  0xef   : > { %v2112_v60 = vpop.eup %2111  ;;  %1939 = vmatprep.mubr.msk.f32.mxu1 %vm254_vm0, %v2110_v58  ;;  %2129 = vtanh.f32 %v420_v57 }
  0xf0   : > { %1940 = vmatmul.mubr.msk.f32.vlgmr.msra.gmra.mxu1 %vm254_vm0, %v2112_v60  ;;  %2131 = vtanh.f32 %v425_v61 }
  0xf1   : > { %2133 = vtanh.f32 %v430_v62  ;;  %2004 = vmatpush3.msra.mxu1 %v1716_v25 }
  0xf2   : > { %v2114_v63 = vpop.eup %2113  ;;  %2135 = vtanh.f32 %v435_v2  ;;  %2005 = vmatprep.subr.mxu1 %v1715_v26 }
  0xf3   : > { %v2116_v1 = vpop.eup %2115  ;;  %1942 = vmatprep.mubr.msk.f32.mxu1 %vm254_vm0, %v2114_v63  ;;  %2137 = vtanh.f32 %v440_v4  ;;  %2006 = vmatpush3.msra.mxu1 %v1715_v26 }
  0xf4   : > { %1943 = vmatmul.mubr.msk.f32.gmra.mxu1 %vm254_vm0, %v2116_v1  ;;  %v2118_v3 = vpop.eup %2117  ;;  %2139 = vtanh.f32 %v445_v7  ;;  %2007 = vmatprep.subr.mxu1 %v1714_v27 }
  0xf5   : > { %2008 = vmatpush3.msra.mxu1 %v1714_v27 }
  0xf6   : > { %v2120_v5 = vpop.eup %2119  ;;  %2009 = vmatprep.subr.mxu1 %v1713_v28 }
  0xf7   : > { %1945 = vmatprep.mubr.msk.f32.mxu1 %vm254_vm0, %v2120_v5  ;;  %v2122_v6 = vpop.eup %2121  ;;  %2010 = vmatpush3.msra.mxu1 %v1713_v28 }
  0xf8   : > { %1946 = vmatmul.mubr.msk.f32.gmra.mxu1 %vm254_vm0, %v2118_v3  ;;  %v2124_v8 = vpop.eup %2123 }
  0xfa   : > { %v2126_v9 = vpop.eup %2125 }
  0xfb   : > { %1948 = vmatprep.mubr.msk.f32.mxu1 %vm254_vm0, %v2126_v9  ;;  %v2128_v10 = vpop.eup %2127 }
  0xfc   : > { %1949 = vmatmul.mubr.msk.f32.gmra.mxu1 %vm254_vm0, %v2124_v8  ;;  %v2130_v11 = vpop.eup %2129 }
  0xfd   : > { %1951 = vmatprep.mubr.msk.f32.mxu1 %vm254_vm0, %v2122_v6  ;;  %v2132_v12 = vpop.eup %2131 }
  0xfe   : > { %v2134_v13 = vpop.eup %2133 }
  0xff   : > { %v2136_v14 = vpop.eup %2135 }
 0x100   : > { %1952 = vmatmul.mubr.msk.f32.gmra.mxu1 %vm254_vm0, %v2128_v10  ;;  %v2138_v15 = vpop.eup %2137 }
 0x101   : > { %1954 = vmatprep.mubr.msk.f32.mxu1 %vm254_vm0, %v2130_v11  ;;  %v2140_v16 = vpop.eup %2139 }
 0x104   : > { %1955 = vmatmul.mubr.msk.f32.gmra.mxu1 %vm254_vm0, %v2132_v12 }
 0x105   : > { %1957 = vmatprep.mubr.msk.f32.mxu1 %vm254_vm0, %v2134_v13 }
 0x108   : > { %1958 = vmatmul.mubr.msk.f32.gmra.mxu1 %vm254_vm0, %v2136_v14  ;;  %v1712_v14 = vld [vmem:[%s2696_s2 + $0xd8] sm:$0xff] }
 0x109   : > { %1960 = vmatprep.mubr.msk.f32.mxu1 %vm254_vm0, %v2138_v15  ;;  %2011 = vmatprep.subr.mxu1 %v1712_v14  ;;  %v1711_v15 = vld [vmem:[%s2696_s2 + $0xd0] sm:$0xff] }
 0x10a   : > { %2012 = vmatpush3.msra.mxu1 %v1712_v14 }
 0x10b   : > { %2013 = vmatprep.subr.mxu1 %v1711_v15 }
 0x10c   : > { %1961 = vmatmul.mubr.msk.f32.gmra.mxu1 %vm254_vm0, %v2140_v16  ;;  %v1710_v16 = vld [vmem:[%s2696_s2 + $0xc8] sm:$0xff] }
 0x10d   : > { %2014 = vmatpush3.msra.mxu1 %v1711_v15 }
 0x10e   : > { %2015 = vmatprep.subr.mxu1 %v1710_v16 }
 0x10f   : > { %2016 = vmatpush3.msra.mxu1 %v1710_v16 }
 0x110   : > { %2017 = vmatprep.subr.mxu1 %v1709_v17 }
 0x111   : > { %2018 = vmatpush3.msra.mxu1 %v1709_v17 }
 0x1b0   : > { %v1941_v30 = vpop.f32.mrf.mxu1 }
 0x1b1   : > { %v601_v31 = vadd.f32 %v1941_v30, %v1666_v29 }
 0x1b2   : > { %v595_v32 = vpop.f32.mrf.mxu1 }
 0x1b3   : > { %v596_v33 = vadd.f32 %v1666_v29, %v595_v32 }
 0x1b4   : > { %v1944_v34 = vpop.f32.mrf.mxu1 }
 0x1b5   : > { %2141 = vtanh.f32 %v596_v33  ;;  %v611_v35 = vadd.f32 %v1944_v34, %v1666_v29 }
 0x1b6   : > { %2143 = vtanh.f32 %v601_v31  ;;  %v605_v36 = vpop.f32.mrf.mxu1 }
 0x1b7   : > { %v606_v37 = vadd.f32 %v1666_v29, %v605_v36 }
 0x1b8   : > { %v1947_v38 = vpop.f32.mrf.mxu1 }
 0x1b9   : > { %2145 = vtanh.f32 %v606_v37  ;;  %v621_v39 = vadd.f32 %v1947_v38, %v1666_v29 }
 0x1ba   : > { %2147 = vtanh.f32 %v611_v35  ;;  %v615_v40 = vpop.f32.mrf.mxu1 }
 0x1bb   : > { %v616_v41 = vadd.f32 %v1666_v29, %v615_v40 }
 0x1bc   : > { %v1950_v42 = vpop.f32.mrf.mxu1 }
 0x1bd   : > { %2149 = vtanh.f32 %v616_v41  ;;  %v631_v43 = vadd.f32 %v1950_v42, %v1666_v29 }
 0x1be   : > { %2151 = vtanh.f32 %v621_v39  ;;  %v625_v44 = vpop.f32.mrf.mxu1 }
 0x1bf   : > { %v626_v45 = vadd.f32 %v1666_v29, %v625_v44 }
 0x1c0   : > { %v1953_v46 = vpop.f32.mrf.mxu1 }
 0x1c1   : > { %2153 = vtanh.f32 %v626_v45  ;;  %v641_v48 = vadd.f32 %v1953_v46, %v1666_v29 }
 0x1c2   : > { %v2142_v47 = vpop.eup %2141  ;;  %2155 = vtanh.f32 %v631_v43  ;;  %v635_v49 = vpop.f32.mrf.mxu1 }
 0x1c3   : > { %v2144_v50 = vpop.eup %2143  ;;  %v636_v51 = vadd.f32 %v1666_v29, %v635_v49  ;;  %1979 = vmatprep.mubr.msk.f32.mxu0 %vm254_vm0, %v2142_v47 }
 0x1c4   : > { %v1956_v52 = vpop.f32.mrf.mxu1  ;;  %1980 = vmatmul.mubr.msk.f32.vlgmr.msra.gmra.mxu0 %vm254_vm0, %v2144_v50 }
 0x1c5   : > { %2157 = vtanh.f32 %v636_v51  ;;  %v651_v54 = vadd.f32 %v1956_v52, %v1666_v29  ;;  %2044 = vmatpush3.msra.mxu0 %v1742_v18 }
 0x1c6   : > { %v2146_v53 = vpop.eup %2145  ;;  %2159 = vtanh.f32 %v641_v48  ;;  %v645_v55 = vpop.f32.mrf.mxu1  ;;  %2045 = vmatprep.subr.mxu0 %v1741_v19 }
 0x1c7   : > { %v2148_v56 = vpop.eup %2147  ;;  %v646_v57 = vadd.f32 %v1666_v29, %v645_v55  ;;  %1982 = vmatprep.mubr.msk.f32.mxu0 %vm254_vm0, %v2146_v53  ;;  %2046 = vmatpush3.msra.mxu0 %v1741_v19 }
 0x1c8   : > { %v1959_v58 = vpop.f32.mrf.mxu1  ;;  %1983 = vmatmul.mubr.msk.f32.gmra.mxu0 %vm254_vm0, %v2148_v56  ;;  %2047 = vmatprep.subr.mxu0 %v1740_v20 }
 0x1c9   : > { %2161 = vtanh.f32 %v646_v57  ;;  %v661_v60 = vadd.f32 %v1959_v58, %v1666_v29  ;;  %2048 = vmatpush3.msra.mxu0 %v1740_v20 }
 0x1ca   : > { %v2150_v59 = vpop.eup %2149  ;;  %2163 = vtanh.f32 %v651_v54  ;;  %v655_v61 = vpop.f32.mrf.mxu1  ;;  %2049 = vmatprep.subr.mxu0 %v1739_v21 }
 0x1cb   : > { %v2152_v62 = vpop.eup %2151  ;;  %v656_v63 = vadd.f32 %v1666_v29, %v655_v61  ;;  %1985 = vmatprep.mubr.msk.f32.mxu0 %vm254_vm0, %v2150_v59  ;;  %2050 = vmatpush3.msra.mxu0 %v1739_v21 }
 0x1cc   : > { %v1962_v0 = vpop.f32.mrf.mxu1  ;;  %1986 = vmatmul.mubr.msk.f32.gmra.mxu0 %vm254_vm0, %v2152_v62 }
 0x1cd   : > { %2165 = vtanh.f32 %v656_v63  ;;  %v671_v2 = vadd.f32 %v1962_v0, %v1666_v29 }
 0x1ce   : > { %v2154_v1 = vpop.eup %2153  ;;  %2167 = vtanh.f32 %v661_v60  ;;  %v665_v3 = vpop.f32.mrf.mxu1 }
 0x1cf   : > { %v2156_v4 = vpop.eup %2155  ;;  %v666_v5 = vadd.f32 %v1666_v29, %v665_v3  ;;  %1988 = vmatprep.mubr.msk.f32.mxu0 %vm254_vm0, %v2154_v1 }
 0x1d0   : > { %1989 = vmatmul.mubr.msk.f32.gmra.mxu0 %vm254_vm0, %v2156_v4 }
 0x1d1   : > { %2169 = vtanh.f32 %v666_v5 }
 0x1d2   : > { %v2158_v6 = vpop.eup %2157  ;;  %2171 = vtanh.f32 %v671_v2 }
 0x1d3   : > { %v2160_v7 = vpop.eup %2159  ;;  %1991 = vmatprep.mubr.msk.f32.mxu0 %vm254_vm0, %v2158_v6 }
 0x1d4   : > { %1992 = vmatmul.mubr.msk.f32.gmra.mxu0 %vm254_vm0, %v2160_v7  ;;  %v1738_v7 = vld [vmem:[%s2696_s2 + $0x118] sm:$0xff] }
 0x1d5   : > { %2051 = vmatprep.subr.mxu0 %v1738_v7 }
 0x1d6   : > { %v2162_v8 = vpop.eup %2161  ;;  %2052 = vmatpush3.msra.mxu0 %v1738_v7 }
 0x1d7   : > { %v2164_v9 = vpop.eup %2163  ;;  %1994 = vmatprep.mubr.msk.f32.mxu0 %vm254_vm0, %v2162_v8  ;;  %v1737_v8 = vld [vmem:[%s2696_s2 + $0x110] sm:$0xff] }
 0x1d8   : > { %1995 = vmatmul.mubr.msk.f32.gmra.mxu0 %vm254_vm0, %v2164_v9  ;;  %2053 = vmatprep.subr.mxu0 %v1737_v8  ;;  %v1736_v9 = vld [vmem:[%s2696_s2 + $0x108] sm:$0xff] }
 0x1d9   : > { %2054 = vmatpush3.msra.mxu0 %v1737_v8 }
 0x1da   : > { %v2166_v10 = vpop.eup %2165  ;;  %2055 = vmatprep.subr.mxu0 %v1736_v9 }
 0x1db   : > { %v2168_v11 = vpop.eup %2167  ;;  %1997 = vmatprep.mubr.msk.f32.mxu0 %vm254_vm0, %v2166_v10  ;;  %2056 = vmatpush3.msra.mxu0 %v1736_v9  ;;  %v1735_v10 = vld [vmem:[%s2696_s2 + $0x100] sm:$0xff] }
 0x1dc   : > { %1998 = vmatmul.mubr.msk.f32.gmra.mxu0 %vm254_vm0, %v2168_v11  ;;  %2057 = vmatprep.subr.mxu0 %v1735_v10  ;;  %v1718_v11 = vld [vmem:[%s2697_s3 + $0x3] ss:$0 sm:$0xff] }
 0x1dd   : > { %2058 = vmatpush3.msra.mxu0 %v1735_v10 }
 0x1de   : > { %v2170_v12 = vpop.eup %2169 }
 0x1df   : > { %v2172_v13 = vpop.eup %2171  ;;  %2000 = vmatprep.mubr.msk.f32.mxu0 %vm254_vm0, %v2170_v12 }
 0x1e0   : > { %2001 = vmatmul.mubr.msk.f32.gmra.mxu0 %vm254_vm0, %v2172_v13 }
 0x284   : > { %v1981_v23 = vpop.f32.mrf.mxu0 }
 0x285   : > { %v827_v24 = vadd.f32 %v1981_v23, %v1692_v22 }
 0x286   : > { %v821_v25 = vpop.f32.mrf.mxu0 }
 0x287   : > { %v822_v26 = vadd.f32 %v1692_v22, %v821_v25 }
 0x288   : > { %v1984_v27 = vpop.f32.mrf.mxu0 }
 0x289   : > { %2173 = vtanh.f32 %v822_v26  ;;  %v837_v28 = vadd.f32 %v1984_v27, %v1692_v22 }
 0x28a   : > { %2175 = vtanh.f32 %v827_v24  ;;  %v831_v29 = vpop.f32.mrf.mxu0 }
 0x28b   : > { %v832_v30 = vadd.f32 %v1692_v22, %v831_v29 }
 0x28c   : > { %v1987_v31 = vpop.f32.mrf.mxu0 }
 0x28d   : > { %2177 = vtanh.f32 %v832_v30  ;;  %v847_v32 = vadd.f32 %v1987_v31, %v1692_v22 }
 0x28e   : > { %2179 = vtanh.f32 %v837_v28  ;;  %v841_v33 = vpop.f32.mrf.mxu0 }
 0x28f   : > { %v842_v34 = vadd.f32 %v1692_v22, %v841_v33 }
 0x290   : > { %v1990_v35 = vpop.f32.mrf.mxu0 }
 0x291   : > { %2181 = vtanh.f32 %v842_v34  ;;  %v857_v36 = vadd.f32 %v1990_v35, %v1692_v22 }
 0x292   : > { %2183 = vtanh.f32 %v847_v32  ;;  %v851_v37 = vpop.f32.mrf.mxu0 }
 0x293   : > { %v852_v38 = vadd.f32 %v1692_v22, %v851_v37 }
 0x294   : > { %v1993_v39 = vpop.f32.mrf.mxu0 }
 0x295   : > { %2185 = vtanh.f32 %v852_v38  ;;  %v867_v41 = vadd.f32 %v1993_v39, %v1692_v22 }
 0x296   : > { %v2174_v40 = vpop.eup %2173  ;;  %2187 = vtanh.f32 %v857_v36  ;;  %v861_v42 = vpop.f32.mrf.mxu0 }
 0x297   : > { %v2176_v43 = vpop.eup %2175  ;;  %v862_v44 = vadd.f32 %v1692_v22, %v861_v42  ;;  %2019 = vmatprep.mubr.msk.f32.mxu1 %vm254_vm0, %v2174_v40 }
 0x298   : > { %v1996_v45 = vpop.f32.mrf.mxu0  ;;  %2020 = vmatmul.mubr.msk.f32.vlgmr.msra.gmra.mxu1 %vm254_vm0, %v2176_v43 }
 0x299   : > { %2189 = vtanh.f32 %v862_v44  ;;  %v877_v47 = vadd.f32 %v1996_v45, %v1692_v22 }
 0x29a   : > { %v2178_v46 = vpop.eup %2177  ;;  %2191 = vtanh.f32 %v867_v41  ;;  %v871_v48 = vpop.f32.mrf.mxu0 }
 0x29b   : > { %v2180_v49 = vpop.eup %2179  ;;  %v872_v50 = vadd.f32 %v1692_v22, %v871_v48  ;;  %2022 = vmatprep.mubr.msk.f32.mxu1 %vm254_vm0, %v2178_v46 }
 0x29c   : > { %v1999_v51 = vpop.f32.mrf.mxu0  ;;  %2023 = vmatmul.mubr.msk.f32.gmra.mxu1 %vm254_vm0, %v2180_v49 }
 0x29d   : > { %2193 = vtanh.f32 %v872_v50  ;;  %v887_v53 = vadd.f32 %v1999_v51, %v1692_v22 }
 0x29e   : > { %v2182_v52 = vpop.eup %2181  ;;  %2195 = vtanh.f32 %v877_v47  ;;  %v881_v54 = vpop.f32.mrf.mxu0 }
 0x29f   : > { %v2184_v55 = vpop.eup %2183  ;;  %v882_v56 = vadd.f32 %v1692_v22, %v881_v54  ;;  %2025 = vmatprep.mubr.msk.f32.mxu1 %vm254_vm0, %v2182_v52 }
 0x2a0   : > { %v2002_v57 = vpop.f32.mrf.mxu0  ;;  %2026 = vmatmul.mubr.msk.f32.gmra.mxu1 %vm254_vm0, %v2184_v55 }
 0x2a1   : > { %2197 = vtanh.f32 %v882_v56  ;;  %v897_v59 = vadd.f32 %v2002_v57, %v1692_v22 }
 0x2a2   : > { %v2186_v58 = vpop.eup %2185  ;;  %2199 = vtanh.f32 %v887_v53  ;;  %v891_v60 = vpop.f32.mrf.mxu0 }
 0x2a3   : > { %v2188_v61 = vpop.eup %2187  ;;  %v892_v62 = vadd.f32 %v1692_v22, %v891_v60  ;;  %2028 = vmatprep.mubr.msk.f32.mxu1 %vm254_vm0, %v2186_v58  ;;  %v1744_v60 = vld [vmem:[%s2697_s3 + $0x4] ss:$0 sm:$0xff] }
 0x2a4   : > { %2029 = vmatmul.mubr.msk.f32.gmra.mxu1 %vm254_vm0, %v2188_v61 }
 0x2a5   : > { %2201 = vtanh.f32 %v892_v62 }
 0x2a6   : > { %v2190_v63 = vpop.eup %2189  ;;  %2203 = vtanh.f32 %v897_v59 }
 0x2a7   : > { %v2192_v0 = vpop.eup %2191  ;;  %2031 = vmatprep.mubr.msk.f32.mxu1 %vm254_vm0, %v2190_v63 }
 0x2a8   : > { %2032 = vmatmul.mubr.msk.f32.gmra.mxu1 %vm254_vm0, %v2192_v0 }
 0x2aa   : > { %v2194_v1 = vpop.eup %2193 }
 0x2ab   : > { %v2196_v2 = vpop.eup %2195  ;;  %2034 = vmatprep.mubr.msk.f32.mxu1 %vm254_vm0, %v2194_v1 }
 0x2ac   : > { %2035 = vmatmul.mubr.msk.f32.gmra.mxu1 %vm254_vm0, %v2196_v2 }
 0x2ae   : > { %v2198_v3 = vpop.eup %2197 }
 0x2af   : > { %v2200_v4 = vpop.eup %2199  ;;  %2037 = vmatprep.mubr.msk.f32.mxu1 %vm254_vm0, %v2198_v3 }
 0x2b0   : > { %2038 = vmatmul.mubr.msk.f32.gmra.mxu1 %vm254_vm0, %v2200_v4 }
 0x2b2   : > { %v2202_v5 = vpop.eup %2201 }
 0x2b3   : > { %v2204_v6 = vpop.eup %2203  ;;  %2040 = vmatprep.mubr.msk.f32.mxu1 %vm254_vm0, %v2202_v5 }
 0x2b4   : > { %2041 = vmatmul.mubr.msk.f32.gmra.mxu1 %vm254_vm0, %v2204_v6 }
 0x358   : > { %v2021_v12 = vpop.f32.mrf.mxu1 }
 0x359   : > { %v1053_v13 = vadd.f32 %v2021_v12, %v1718_v11 }
 0x35a   : > { %v1047_v14 = vpop.f32.mrf.mxu1 }
 0x35b   : > { %v1048_v15 = vadd.f32 %v1718_v11, %v1047_v14 }
 0x35c   : > { %v2024_v16 = vpop.f32.mrf.mxu1 }
 0x35d   : > { %2205 = vtanh.f32 %v1048_v15  ;;  %v1063_v17 = vadd.f32 %v2024_v16, %v1718_v11 }
 0x35e   : > { %2207 = vtanh.f32 %v1053_v13  ;;  %v1057_v18 = vpop.f32.mrf.mxu1 }
 0x35f   : > { %v1058_v19 = vadd.f32 %v1718_v11, %v1057_v18 }
 0x360   : > { %v2027_v20 = vpop.f32.mrf.mxu1 }
 0x361   : > { %2209 = vtanh.f32 %v1058_v19  ;;  %v1073_v21 = vadd.f32 %v2027_v20, %v1718_v11 }
 0x362   : > { %2211 = vtanh.f32 %v1063_v17  ;;  %v1067_v22 = vpop.f32.mrf.mxu1 }
 0x363   : > { %v1068_v23 = vadd.f32 %v1718_v11, %v1067_v22 }
 0x364   : > { %v2030_v24 = vpop.f32.mrf.mxu1 }
 0x365   : > { %2213 = vtanh.f32 %v1068_v23  ;;  %v1083_v25 = vadd.f32 %v2030_v24, %v1718_v11 }
 0x366   : > { %2215 = vtanh.f32 %v1073_v21  ;;  %v1077_v26 = vpop.f32.mrf.mxu1 }
 0x367   : > { %v1078_v27 = vadd.f32 %v1718_v11, %v1077_v26 }
 0x368   : > { %v2033_v28 = vpop.f32.mrf.mxu1 }
 0x369   : > { %2217 = vtanh.f32 %v1078_v27  ;;  %v1093_v30 = vadd.f32 %v2033_v28, %v1718_v11 }
 0x36a   : > { %v2206_v29 = vpop.eup %2205  ;;  %2219 = vtanh.f32 %v1083_v25  ;;  %v1087_v31 = vpop.f32.mrf.mxu1 }
 0x36b   : > { %v2208_v32 = vpop.eup %2207  ;;  %v1088_v33 = vadd.f32 %v1718_v11, %v1087_v31  ;;  %2059 = vmatprep.mubr.msk.f32.mxu0 %vm254_vm0, %v2206_v29 }
 0x36c   : > { %v2036_v34 = vpop.f32.mrf.mxu1  ;;  %2060 = vmatmul.mubr.msk.f32.vlgmr.msra.gmra.mxu0 %vm254_vm0, %v2208_v32 }
 0x36d   : > { %2221 = vtanh.f32 %v1088_v33  ;;  %v1103_v36 = vadd.f32 %v2036_v34, %v1718_v11 }
 0x36e   : > { %v2210_v35 = vpop.eup %2209  ;;  %2223 = vtanh.f32 %v1093_v30  ;;  %v1097_v37 = vpop.f32.mrf.mxu1 }
 0x36f   : > { %v2212_v38 = vpop.eup %2211  ;;  %v1098_v39 = vadd.f32 %v1718_v11, %v1097_v37  ;;  %2062 = vmatprep.mubr.msk.f32.mxu0 %vm254_vm0, %v2210_v35 }
 0x370   : > { %v2039_v40 = vpop.f32.mrf.mxu1  ;;  %2063 = vmatmul.mubr.msk.f32.gmra.mxu0 %vm254_vm0, %v2212_v38 }
 0x371   : > { %2225 = vtanh.f32 %v1098_v39  ;;  %v1113_v42 = vadd.f32 %v2039_v40, %v1718_v11 }
 0x372   : > { %v2214_v41 = vpop.eup %2213  ;;  %2227 = vtanh.f32 %v1103_v36  ;;  %v1107_v43 = vpop.f32.mrf.mxu1 }
 0x373   : > { %v2216_v44 = vpop.eup %2215  ;;  %v1108_v45 = vadd.f32 %v1718_v11, %v1107_v43  ;;  %2065 = vmatprep.mubr.msk.f32.mxu0 %vm254_vm0, %v2214_v41 }
 0x374   : > { %v2042_v46 = vpop.f32.mrf.mxu1  ;;  %2066 = vmatmul.mubr.msk.f32.gmra.mxu0 %vm254_vm0, %v2216_v44 }
 0x375   : > { %2229 = vtanh.f32 %v1108_v45  ;;  %v1123_v48 = vadd.f32 %v2042_v46, %v1718_v11 }
 0x376   : > { %v2218_v47 = vpop.eup %2217  ;;  %2231 = vtanh.f32 %v1113_v42  ;;  %v1117_v49 = vpop.f32.mrf.mxu1 }
 0x377   : > { %v2220_v50 = vpop.eup %2219  ;;  %v1118_v51 = vadd.f32 %v1718_v11, %v1117_v49  ;;  %2068 = vmatprep.mubr.msk.f32.mxu0 %vm254_vm0, %v2218_v47 }
 0x378   : > { %2069 = vmatmul.mubr.msk.f32.gmra.mxu0 %vm254_vm0, %v2220_v50 }
 0x379   : > { %2233 = vtanh.f32 %v1118_v51 }
 0x37a   : > { %v2222_v52 = vpop.eup %2221  ;;  %2235 = vtanh.f32 %v1123_v48 }
 0x37b   : > { %v2224_v53 = vpop.eup %2223  ;;  %2071 = vmatprep.mubr.msk.f32.mxu0 %vm254_vm0, %v2222_v52 }
 0x37c   : > { %2072 = vmatmul.mubr.msk.f32.gmra.mxu0 %vm254_vm0, %v2224_v53 }
 0x37e   : > { %v2226_v54 = vpop.eup %2225 }
 0x37f   : > { %v2228_v55 = vpop.eup %2227  ;;  %2074 = vmatprep.mubr.msk.f32.mxu0 %vm254_vm0, %v2226_v54 }
 0x380   : > { %2075 = vmatmul.mubr.msk.f32.gmra.mxu0 %vm254_vm0, %v2228_v55 }
 0x382   : > { %v2230_v56 = vpop.eup %2229 }
 0x383   : > { %v2232_v57 = vpop.eup %2231  ;;  %2077 = vmatprep.mubr.msk.f32.mxu0 %vm254_vm0, %v2230_v56 }
 0x384   : > { %2078 = vmatmul.mubr.msk.f32.gmra.mxu0 %vm254_vm0, %v2232_v57 }
 0x386   : > { %v2234_v58 = vpop.eup %2233 }
 0x387   : > { %v2236_v59 = vpop.eup %2235  ;;  %2080 = vmatprep.mubr.msk.f32.mxu0 %vm254_vm0, %v2234_v58 }
 0x388   : > { %2081 = vmatmul.mubr.msk.f32.gmra.mxu0 %vm254_vm0, %v2236_v59 }
 0x42c   : > { %v2061_v61 = vpop.f32.mrf.mxu0 }
 0x42d   : > { %v2519_v62 = vadd.f32 %v2061_v61, %v1744_v60  ;;  %v1353_v61 = vld [vmem:[%s2619_s19 + $0x8] sm:$0xff] }
 0x42e   : > { %v1273_v63 = vpop.f32.mrf.mxu0 }
 0x42f   : > { %1386 = vrot.lane.b32.xlu0 %v2519_v62, %s2245_s14  ;;  %v2523_v1 = vadd.f32 %v1744_v60, %v1273_v63 }
 0x430   : > { %v2064_v0 = vpop.f32.mrf.mxu0 }
 0x431   : > { %v2525_v2 = vadd.f32 %v2064_v0, %v1744_v60 }
 0x432   : > { %v1283_v3 = vpop.f32.mrf.mxu0 }
 0x433   : > { %1390 = vrot.lane.b32.xlu1 %v2525_v2, %s2245_s14  ;;  %1384 = vrot.lane.b32.xlu0 %v2523_v1, %s2245_s14  ;;  %v2531_v5 = vadd.f32 %v1744_v60, %v1283_v3  ;;  %v1355_v3 = vld [vmem:[%s2619_s19 + $0x18] sm:$0xff] }
 0x434   : > { %v2067_v4 = vpop.f32.mrf.mxu0 }
 0x435   : > { %v2537_v9 = vadd.f32 %v2067_v4, %v1744_v60  ;;  %v1352_v4 = vld [vmem:[%s2619_s19] sm:$0xff] }
 0x436   : > { %v1293_v6 = vpop.f32.mrf.mxu0 }
 0x437   : > { %v2533_v7 = vadd.f32 %v1744_v60, %v1293_v6  ;;  %1388 = vrot.lane.b32.xlu1 %v2531_v5, %s2245_s14 }
 0x438   : > { %v2070_v8 = vpop.f32.mrf.mxu0 }
 0x439   : > { %1392 = vrot.lane.b32.xlu0 %v2533_v7, %s2245_s14  ;;  %v2545_v13 = vadd.f32 %v2070_v8, %v1744_v60 }
 0x43a   : > { %v1303_v10 = vpop.f32.mrf.mxu0 }
 0x43b   : > { %v2541_v11 = vadd.f32 %v1744_v60, %v1303_v10  ;;  %1394 = vrot.lane.b32.xlu1 %v2537_v9, %s2245_s14 }
 0x43c   : > { %v2073_v12 = vpop.f32.mrf.mxu0 }
 0x43d   : > { %1396 = vrot.lane.b32.xlu0 %v2541_v11, %s2245_s14  ;;  %v2553_v17 = vadd.f32 %v2073_v12, %v1744_v60 }
 0x43e   : > { %v1313_v14 = vpop.f32.mrf.mxu0 }
 0x43f   : > { %v2549_v15 = vadd.f32 %v1744_v60, %v1313_v14  ;;  %1398 = vrot.lane.b32.xlu1 %v2545_v13, %s2245_s14 }
 0x440   : > { %v2076_v16 = vpop.f32.mrf.mxu0 }
 0x441   : > { %1400 = vrot.lane.b32.xlu0 %v2549_v15, %s2245_s14  ;;  %v2561_v21 = vadd.f32 %v2076_v16, %v1744_v60  ;;  %v1354_v16 = vld [vmem:[%s2619_s19 + $0x10] sm:$0xff] }
 0x442   : > { %v1323_v18 = vpop.f32.mrf.mxu0 }
 0x443   : > { %v2557_v19 = vadd.f32 %v1744_v60, %v1323_v18  ;;  %1402 = vrot.lane.b32.xlu1 %v2553_v17, %s2245_s14 }
 0x444   : > { %v2079_v20 = vpop.f32.mrf.mxu0 }
 0x445   : > { %1404 = vrot.lane.b32.xlu0 %v2557_v19, %s2245_s14  ;;  %v2569_v25 = vadd.f32 %v2079_v20, %v1744_v60 }
 0x446   : > { %v1333_v22 = vpop.f32.mrf.mxu0 }
 0x447   : > { %v2565_v23 = vadd.f32 %v1744_v60, %v1333_v22  ;;  %1406 = vrot.lane.b32.xlu1 %v2561_v21, %s2245_s14 }
 0x448   : > { %v2082_v24 = vpop.f32.mrf.mxu0 }
 0x449   : > { %1408 = vrot.lane.b32.xlu0 %v2565_v23, %s2245_s14  ;;  %v2577_v28 = vadd.f32 %v2082_v24, %v1744_v60  ;;  %v1357_v24 = vld [vmem:[%s2619_s19 + $0x28] sm:$0xff] }
 0x44a   : > { %v1343_v26 = vpop.f32.mrf.mxu0 }
 0x44b   : > { %v2573_v27 = vadd.f32 %v1744_v60, %v1343_v26  ;;  %1410 = vrot.lane.b32.xlu1 %v2569_v25, %s2245_s14  ;;  %v1356_v26 = vld [vmem:[%s2619_s19 + $0x20] sm:$0xff] }
 0x44d   : > { %1412 = vrot.lane.b32.xlu0 %v2573_v27, %s2245_s14 }
 0x44f   : > { %1414 = vrot.lane.b32.xlu1 %v2577_v28, %s2245_s14 }
 0x4a1   : > { %v1387_v29 = vpop.permute.xlu0 %1386 }
 0x4a2   : > { %v1433_v30 = vsub.f32 %v2519_v62, %v1387_v29 }
 0x4a4   : > { %1466 = vrot.lane.b32.xlu1 %v1433_v30, %s2246_s16 }
 0x4a5   : > { %v1391_v31 = vpop.permute.xlu1 %1390  ;;  %v1385_v32 = vpop.permute.xlu0 %1384 }
 0x4a6   : > { %v1435_v33 = vsub.f32 %v2525_v2, %v1391_v31  ;;  %v1432_v34 = vsub.f32 %v2523_v1, %v1385_v32  ;;  %v1359_v32 = vld [vmem:[%s2619_s19 + $0x38] sm:$0xff] }
 0x4a8   : > { %1470 = vrot.lane.b32.xlu1 %v1435_v33, %s2246_s16  ;;  %1464 = vrot.lane.b32.xlu0 %v1432_v34, %s2246_s16  ;;  %v1358_v33 = vld [vmem:[%s2619_s19 + $0x30] sm:$0xff] }
 0x4a9   : > { %v1389_v35 = vpop.permute.xlu1 %1388 }
 0x4aa   : > { %v1434_v36 = vsub.f32 %v2531_v5, %v1389_v35 }
 0x4ab   : > { %v1393_v37 = vpop.permute.xlu0 %1392 }
 0x4ac   : > { %1468 = vrot.lane.b32.xlu0 %v1434_v36, %s2246_s16  ;;  %v1436_v39 = vsub.f32 %v2533_v7, %v1393_v37 }
 0x4ad   : > { %v1395_v38 = vpop.permute.xlu1 %1394 }
 0x4ae   : > { %v1437_v40 = vsub.f32 %v2537_v9, %v1395_v38 }
 0x4af   : > { %v1397_v41 = vpop.permute.xlu0 %1396 }
 0x4b0   : > { %1474 = vrot.lane.b32.xlu1 %v1437_v40, %s2246_s16  ;;  %1472 = vrot.lane.b32.xlu0 %v1436_v39, %s2246_s16  ;;  %v1438_v43 = vsub.f32 %v2541_v11, %v1397_v41  ;;  %v1361_v39 = vld [vmem:[%s2619_s19 + $0x48] sm:$0xff]  ;;  %v1360_v40 = vld [vmem:[%s2619_s19 + $0x40] sm:$0xff] }
 0x4b1   : > { %v1399_v42 = vpop.permute.xlu1 %1398 }
 0x4b2   : > { %v1439_v44 = vsub.f32 %v2545_v13, %v1399_v42 }
 0x4b3   : > { %v1401_v45 = vpop.permute.xlu0 %1400 }
 0x4b4   : > { %1478 = vrot.lane.b32.xlu1 %v1439_v44, %s2246_s16  ;;  %1476 = vrot.lane.b32.xlu0 %v1438_v43, %s2246_s16  ;;  %v1440_v47 = vsub.f32 %v2549_v15, %v1401_v45  ;;  %v1363_v45 = vld [vmem:[%s2619_s19 + $0x58] sm:$0xff] }
 0x4b5   : > { %v1403_v46 = vpop.permute.xlu1 %1402 }
 0x4b6   : > { %v1441_v48 = vsub.f32 %v2553_v17, %v1403_v46  ;;  %v1362_v46 = vld [vmem:[%s2619_s19 + $0x50] sm:$0xff] }
 0x4b7   : > { %v1405_v49 = vpop.permute.xlu0 %1404 }
 0x4b8   : > { %1482 = vrot.lane.b32.xlu1 %v1441_v48, %s2246_s16  ;;  %1480 = vrot.lane.b32.xlu0 %v1440_v47, %s2246_s16  ;;  %v1442_v51 = vsub.f32 %v2557_v19, %v1405_v49 }
 0x4b9   : > { %v1407_v50 = vpop.permute.xlu1 %1406 }
 0x4ba   : > { %v1443_v52 = vsub.f32 %v2561_v21, %v1407_v50 }
 0x4bb   : > { %v1409_v53 = vpop.permute.xlu0 %1408 }
 0x4bc   : > { %1486 = vrot.lane.b32.xlu1 %v1443_v52, %s2246_s16  ;;  %1484 = vrot.lane.b32.xlu0 %v1442_v51, %s2246_s16  ;;  %v1444_v55 = vsub.f32 %v2565_v23, %v1409_v53  ;;  %v1365_v51 = vld [vmem:[%s2619_s19 + $0x68] sm:$0xff]  ;;  %v1364_v52 = vld [vmem:[%s2619_s19 + $0x60] sm:$0xff] }
 0x4bd   : > { %v1411_v54 = vpop.permute.xlu1 %1410 }
 0x4be   : > { %v1445_v56 = vsub.f32 %v2569_v25, %v1411_v54 }
 0x4bf   : > { %v1413_v57 = vpop.permute.xlu0 %1412 }
 0x4c0   : > { %1490 = vrot.lane.b32.xlu1 %v1445_v56, %s2246_s16  ;;  %1488 = vrot.lane.b32.xlu0 %v1444_v55, %s2246_s16  ;;  %v1446_v59 = vsub.f32 %v2573_v27, %v1413_v57  ;;  %v1367_v57 = vld [vmem:[%s2619_s19 + $0x78] sm:$0xff] }
 0x4c1   : > { %v1415_v58 = vpop.permute.xlu1 %1414 }
 0x4c2   : > { %v1447_v60 = vsub.f32 %v2577_v28, %v1415_v58  ;;  %v1366_v58 = vld [vmem:[%s2619_s19 + $0x70] sm:$0xff] }
 0x4c4   : > { %1494 = vrot.lane.b32.xlu1 %v1447_v60, %s2246_s16  ;;  %1492 = vrot.lane.b32.xlu0 %v1446_v59, %s2246_s16 }
 0x516   : > { %v1467_v63 = vpop.permute.xlu1 %1466 }
 0x517   : > { %v1513_v0 = vmul.f32 %v1467_v63, %v1353_v61 }
 0x519   : > { %v1529_v6 = vadd.f32 %v1513_v0, %v2519_v62 }
 0x51a   : > { %v1471_v8 = vpop.permute.xlu1 %1470  ;;  %v1465_v10 = vpop.permute.xlu0 %1464 }
 0x51b   : > { %1546 = vst.msk [vmem:[%s2626_s22 + $0x8] sm:$0xff] %vm1544_vm1, %v1529_v6  ;;  %v1515_v12 = vmul.f32 %v1471_v8, %v1355_v3  ;;  %v1512_v14 = vmul.f32 %v1465_v10, %v1352_v4 }
 0x51d   : > { %v1531_v18 = vadd.f32 %v1515_v12, %v2525_v2  ;;  %v1528_v20 = vadd.f32 %v1512_v14, %v2523_v1 }
 0x51e   : > { %v1469_v22 = vpop.permute.xlu0 %1468 }
 0x51f   : > { %1548 = vst.msk [vmem:[%s2626_s22 + $0x18] sm:$0xff] %vm1544_vm1, %v1531_v18  ;;  %1545 = vst.msk [vmem:[%s2626_s22] sm:$0xff] %vm1544_vm1, %v1528_v20  ;;  %v1514_v62 = vmul.f32 %v1469_v22, %v1354_v16 }
 0x521   : > { %v1530_v29 = vadd.f32 %v1514_v62, %v2531_v5 }
 0x522   : > { %v1475_v30 = vpop.permute.xlu1 %1474  ;;  %v1473_v31 = vpop.permute.xlu0 %1472 }
 0x523   : > { %1547 = vst.msk [vmem:[%s2626_s22 + $0x10] sm:$0xff] %vm1544_vm1, %v1530_v29  ;;  %v1517_v2 = vmul.f32 %v1475_v30, %v1357_v24  ;;  %v1516_v1 = vmul.f32 %v1473_v31, %v1356_v26 }
 0x525   : > { %v1533_v34 = vadd.f32 %v1517_v2, %v2537_v9  ;;  %v1532_v35 = vadd.f32 %v1516_v1, %v2533_v7 }
 0x526   : > { %v1479_v36 = vpop.permute.xlu1 %1478  ;;  %v1477_v37 = vpop.permute.xlu0 %1476 }
 0x527   : > { %1550 = vst.msk [vmem:[%s2626_s22 + $0x28] sm:$0xff] %vm1544_vm1, %v1533_v34  ;;  %1549 = vst.msk [vmem:[%s2626_s22 + $0x20] sm:$0xff] %vm1544_vm1, %v1532_v35  ;;  %v1519_v5 = vmul.f32 %v1479_v36, %v1359_v32  ;;  %v1518_v38 = vmul.f32 %v1477_v37, %v1358_v33 }
 0x529   : > { %v1535_v41 = vadd.f32 %v1519_v5, %v2545_v13  ;;  %v1534_v9 = vadd.f32 %v1518_v38, %v2541_v11 }
 0x52a   : > { %v1483_v42 = vpop.permute.xlu1 %1482  ;;  %v1481_v7 = vpop.permute.xlu0 %1480 }
 0x52b   : > { %1552 = vst.msk [vmem:[%s2626_s22 + $0x38] sm:$0xff] %vm1544_vm1, %v1535_v41  ;;  %1551 = vst.msk [vmem:[%s2626_s22 + $0x30] sm:$0xff] %vm1544_vm1, %v1534_v9  ;;  %v1521_v43 = vmul.f32 %v1483_v42, %v1361_v39  ;;  %v1520_v44 = vmul.f32 %v1481_v7, %v1360_v40 }
 0x52d   : > { %v1537_v47 = vadd.f32 %v1521_v43, %v2553_v17  ;;  %v1536_v13 = vadd.f32 %v1520_v44, %v2549_v15 }
 0x52e   : > { %v1487_v48 = vpop.permute.xlu1 %1486  ;;  %v1485_v11 = vpop.permute.xlu0 %1484 }
 0x52f   : > { %1554 = vst.msk [vmem:[%s2626_s22 + $0x48] sm:$0xff] %vm1544_vm1, %v1537_v47  ;;  %1553 = vst.msk [vmem:[%s2626_s22 + $0x40] sm:$0xff] %vm1544_vm1, %v1536_v13  ;;  %v1523_v49 = vmul.f32 %v1487_v48, %v1363_v45  ;;  %v1522_v50 = vmul.f32 %v1485_v11, %v1362_v46 }
 0x531   : > { %v1539_v53 = vadd.f32 %v1523_v49, %v2561_v21  ;;  %v1538_v17 = vadd.f32 %v1522_v50, %v2557_v19 }
 0x532   : > { %v1491_v54 = vpop.permute.xlu1 %1490  ;;  %v1489_v15 = vpop.permute.xlu0 %1488 }
 0x533   : > { %1556 = vst.msk [vmem:[%s2626_s22 + $0x58] sm:$0xff] %vm1544_vm1, %v1539_v53  ;;  %1555 = vst.msk [vmem:[%s2626_s22 + $0x50] sm:$0xff] %vm1544_vm1, %v1538_v17  ;;  %v1525_v55 = vmul.f32 %v1491_v54, %v1365_v51  ;;  %v1524_v56 = vmul.f32 %v1489_v15, %v1364_v52 }
 0x535   : > { %v1541_v59 = vadd.f32 %v1525_v55, %v2569_v25  ;;  %v1540_v60 = vadd.f32 %v1524_v56, %v2565_v23 }
 0x536   : > { %v1495_v61 = vpop.permute.xlu1 %1494  ;;  %v1493_v21 = vpop.permute.xlu0 %1492 }
 0x537   : > { %1558 = vst.msk [vmem:[%s2626_s22 + $0x68] sm:$0xff] %vm1544_vm1, %v1541_v59  ;;  %1557 = vst.msk [vmem:[%s2626_s22 + $0x60] sm:$0xff] %vm1544_vm1, %v1540_v60  ;;  %v1527_v19 = vmul.f32 %v1495_v61, %v1367_v57  ;;  %v1526_v63 = vmul.f32 %v1493_v21, %v1366_v58 }
 0x539   : > { %v1543_v0 = vadd.f32 %v1527_v19, %v2577_v28  ;;  %v1542_v3 = vadd.f32 %v1526_v63, %v2573_v27 }
 0x53b   : > { %1560 = vst.msk [vmem:[%s2626_s22 + $0x78] sm:$0xff] %vm1544_vm1, %v1543_v0  ;;  %1559 = vst.msk [vmem:[%s2626_s22 + $0x70] sm:$0xff] %vm1544_vm1, %v1542_v3 }
 0x53c PF: > { %s14_s15 = sadd.s32 1, %s2243_s15  }
 0x53d   : > { %p11_p4 = scmp.ge.s32.totalorder %s14_s15, 4  }
 0x53f   :  { %13 = sbr.rel (!%p11_p4) target bundleno = 1 (0x1), region = 77 }

</bundles_post_ra>
